<compile_context>
chip_gen: v5e
topology: v5e:2x2
jax: 0.10.0
libtpu: 0.0.40
codegen_flags: <defaults>
</compile_context>

<pallas_src>
import math

import jax
import jax.numpy as jnp
from jax.experimental import pallas as pl
from jax.experimental.pallas import tpu as pltpu

_LANE = 128
_VMEM_LIMIT_BYTES = 32 * 1024 * 1024    # explicit scoped-VMEM limit (safe on v5e/v6e/v7x)
_INPUT_VMEM_BUDGET = 24 * 1024 * 1024   # total budget for double-buffered input blocks
_MAX_BLOCK_BYTES = 8 * 1024 * 1024      # per-input block cap (amortizes per-step overhead)


def _cdiv(a, b):
    return -(-a // b)


def _round_up(x, m):
    return ((x + m - 1) // m) * m


def _detect_num_cores():
    """Best-effort TensorCores-per-chip (2 on v7x); defaults to 1 if unknown."""
    try:
        info = pltpu.get_tpu_info()
    except Exception:
        return 1
    for name in ("num_tensorcores", "tensorcores_per_chip", "num_tensor_cores",
                 "num_cores", "core_count"):
        val = getattr(info, name, None)
        if isinstance(val, int) and val >= 1:
            return val
    return 1


def _lane_dense_view(x):
    """View x for streaming: fully lane-dense (rows, 128) whenever possible."""
    total = int(x.size)
    if total % _LANE == 0:
        return x.reshape(total // _LANE, _LANE)   # free bitcast, 100% lane utilization
    if x.ndim >= 2:
        return x.reshape(-1, x.shape[-1])         # natural-layout fallback
    return x.reshape(1, total)                    # 1-D fallback: fill lanes, not sublanes


def _row_tiling(view, block_bytes):
    """Row-tile (multiple of sublane packing) sized from lane-PADDED bytes."""
    n_rows, width = view.shape
    itemsize = jnp.dtype(view.dtype).itemsize
    row_align = max(8, 32 // itemsize)            # f32:8  bf16:16  int8:32
    padded_row_bytes = _round_up(width, _LANE) * itemsize
    rows = max(block_bytes // padded_row_bytes, 1)
    rows = max((rows // row_align) * row_align, row_align)
    tile_rows = min(rows, n_rows)                 # full extent for small tables
    return tile_rows, _cdiv(n_rows, tile_rows)


def emb_loss(*embeddings, norm=2, target_block_bytes=None, num_cores=None):
    """Pallas implementation of EmbLoss.forward (module default norm=2)."""
    # TODO(synk): general p-norm (p != 2) would need |x|^p inside the kernel;
    # the module default (and the only value used) is p=2, implemented here.
    assert norm == 2, "only the default L2 norm is implemented"
    assert len(embeddings) >= 1
    batch = int(embeddings[-1].shape[0])
    inv_batch = 1.0 / float(batch)

    views = [_lane_dense_view(e) for e in embeddings if int(e.size) > 0]
    if not views:
        return jnp.zeros((1,), jnp.float32)
    n_tables = len(views)

    if target_block_bytes is None:
        block_bytes = min(_MAX_BLOCK_BYTES,
                          max(_INPUT_VMEM_BUDGET // (2 * n_tables), 128 * 1024))
    else:
        block_bytes = int(target_block_bytes)

    # Static per-table tile ranges of the fused grid.
    tile_rows, ntiles, starts, ends, valid_last = [], [], [], [], []
    total_tiles = 0
    for view in views:
        tr, nt = _row_tiling(view, block_bytes)
        rem = view.shape[0] % tr
        tile_rows.append(tr)
        ntiles.append(nt)
        starts.append(total_tiles)
        ends.append(total_tiles + nt)
        valid_last.append(rem if rem else None)   # rows valid in the ragged last tile
        total_tiles += nt

    # Optional split of the tile stream across TensorCores (v7x only).
    cores = int(num_cores) if num_cores is not None else _detect_num_cores()
    core_parallel = getattr(pltpu, "CORE_PARALLEL", None)
    num_splits = cores if (cores > 1 and core_parallel is not None
                           and total_tiles >= cores) else 1
    tiles_per_split = _cdiv(total_tiles, num_splits)

    def kernel(*refs):
        in_refs = refs[:n_tables]
        o_ref = refs[n_tables]
        acc_refs = refs[n_tables + 1:]

        if num_splits == 1:
            i = pl.program_id(0)
            g = i
        else:
            c = pl.program_id(0)
            i = pl.program_id(1)
            g = c * tiles_per_split + i

        @pl.when(i == 0)
        def _init():
            for acc in acc_refs:
                acc[...] = jnp.zeros_like(acc)

        def make_accum(x_ref, acc, mask_rows):
            def _body():
                xf = x_ref[...].astype(jnp.float32)
                if mask_rows is not None:   # static mask; only on a table's last tile
                    ridx = jax.lax.broadcasted_iota(jnp.int32, xf.shape, 0)
                    xm = jnp.where(ridx < mask_rows, xf, 0.0)
                else:
                    xm = xf
                # Sublane-only reduce into a lane-parallel accumulator; the
                # cross-lane reduce is deferred to the final grid step.
                acc[...] = acc[...] + jnp.sum(xm * xm, axis=0, keepdims=True)
            return _body

        for t in range(n_tables):
            s, e, v = starts[t], ends[t], valid_last[t]
            if v is None:
                pl.when((g >= s) & (g < e))(make_accum(in_refs[t], acc_refs[t], None))
            else:
                if e - 1 > s:   # full, unmasked tiles of this table
                    pl.when((g >= s) & (g < e - 1))(
                        make_accum(in_refs[t], acc_refs[t], None))
                pl.when(g == e - 1)(make_accum(in_refs[t], acc_refs[t], v))

        @pl.when(i == tiles_per_split - 1)
        def _finalize():
            if num_splits == 1:
                # Fully fused: per-table sqrt, sum over tables, divide by batch.
                total = jnp.float32(0.0)
                for acc in acc_refs:
                    total = total + jnp.sqrt(jnp.sum(acc[...]))
                o_ref[...] = jnp.full(o_ref.shape, total * inv_batch, dtype=o_ref.dtype)
            else:
                # Per-core, per-table partial sums of squares; combined in the wrapper.
                for t in range(n_tables):
                    o_ref[0, t, :] = jnp.full((_LANE,), jnp.sum(acc_refs[t][...]),
                                              dtype=o_ref.dtype)

    # Each table owns grid tiles [start, end); outside that range its block index
    # is pinned (clamped), so the pipeline issues no extra DMAs for idle tables.
    in_specs = []
    for t, view in enumerate(views):
        if num_splits == 1:
            def idx_map(i, s=starts[t], nt=ntiles[t]):
                return (jnp.clip(i - s, 0, nt - 1), 0)
        else:
            def idx_map(c, i, s=starts[t], nt=ntiles[t]):
                return (jnp.clip(c * tiles_per_split + i - s, 0, nt - 1), 0)
        in_specs.append(pl.BlockSpec((tile_rows[t], view.shape[1]), idx_map))

    if num_splits == 1:
        grid = (total_tiles,)
        out_shape = jax.ShapeDtypeStruct((8, _LANE), jnp.float32)
        out_spec = pl.BlockSpec((8, _LANE), lambda i: (0, 0))
        semantics = ("arbitrary",)
    else:
        grid = (num_splits, tiles_per_split)
        out_shape = jax.ShapeDtypeStruct((num_splits, n_tables, _LANE), jnp.float32)
        out_spec = pl.BlockSpec((1, n_tables, _LANE), lambda c, i: (c, 0, 0))
        semantics = (core_parallel, "arbitrary")

    scratch_shapes = [pltpu.VMEM((1, view.shape[1]), jnp.float32) for view in views]

    flops = int(sum(2 * int(v.size) for v in views))
    bytes_accessed = int(sum(int(v.size) * jnp.dtype(v.dtype).itemsize for v in views)
                         + math.prod(out_shape.shape) * 4)

    out = pl.pallas_call(
        kernel,
        out_shape=out_shape,
        grid_spec=pltpu.PrefetchScalarGridSpec(
            num_scalar_prefetch=0,
            grid=grid,
            in_specs=in_specs,
            out_specs=out_spec,
            scratch_shapes=scratch_shapes),
        compiler_params=pltpu.CompilerParams(
            dimension_semantics=semantics,
            vmem_limit_bytes=_VMEM_LIMIT_BYTES),
        cost_estimate=pl.CostEstimate(
            flops=flops, transcendentals=n_tables, bytes_accessed=bytes_accessed),
    )(*views)

    if num_splits == 1:
        loss = out[0, 0]
    else:
        sos = jnp.sum(out[:, :, 0], axis=0)          # cross-core combine per table
        loss = jnp.sum(jnp.sqrt(sos)) * inv_batch
    return loss.reshape(1).astype(jnp.float32)


def _ref_norm(x):
    return jnp.sqrt(jnp.sum(jnp.square(x.astype(jnp.float32))))


if __name__ == "__main__":
    key = jax.random.PRNGKey(0)
    ks = jax.random.split(key, 7)

    # --- small tables, lane-dense path, mixed dtypes, one fused pallas_call ---
    emb_user = jax.random.normal(ks[0], (8, 32), dtype=jnp.float32)
    emb_item = jax.random.normal(ks[1], (16, 32), dtype=jnp.float32)
    emb_ctx = jax.random.normal(ks[2], (4, 32), dtype=jnp.bfloat16)   # native bf16 read

    loss = jax.block_until_ready(emb_loss(emb_user, emb_item, emb_ctx))
    ref = (_ref_norm(emb_user) + _ref_norm(emb_item)
           + _ref_norm(emb_ctx)) / emb_ctx.shape[0]
    assert loss.shape == (1,) and loss.dtype == jnp.float32
    assert jnp.allclose(loss[0], ref, rtol=1e-5, atol=1e-5), (loss, ref)

    # --- multi-tile + ragged last tile + non-128-divisible fallback + 1-D path,
    #     with a tiny block budget to force several grid steps per table ---
    emb_a = jax.random.normal(ks[3], (1050, 32), dtype=jnp.float32)   # fallback, ragged
    emb_b = jax.random.normal(ks[4], (523, 48), dtype=jnp.bfloat16)   # fallback, ragged
    emb_c = jax.random.normal(ks[5], (512, 64), dtype=jnp.float32)    # lane-dense, 32 tiles
    emb_d = jax.random.normal(ks[6], (384,), dtype=jnp.float32)       # 1-D, lane-dense
    loss2 = jax.block_until_ready(
        emb_loss(emb_a, emb_b, emb_c, emb_d, target_block_bytes=4096))
    ref2 = (_ref_norm(emb_a) + _ref_norm(emb_b) + _ref_norm(emb_c)
            + _ref_norm(emb_d)) / emb_d.shape[0]
    assert loss2.shape == (1,)
    assert jnp.allclose(loss2[0], ref2, rtol=1e-4, atol=1e-4), (loss2, ref2)

    print("KERNEL_OK")
</pallas_src>

<mosaic_0001>
module attributes {stable_mosaic.version = 11 : i64} {
  func.func @kernel(%arg0: i32, %arg1: memref<2x128xf32, #tpu.memory_space<vmem>>, %arg2: memref<4x128xf32, #tpu.memory_space<vmem>>, %arg3: memref<1x128xbf16, #tpu.memory_space<vmem>>, %arg4: memref<8x128xf32, #tpu.memory_space<vmem>>, %arg5: memref<1x128xf32, #tpu.memory_space<vmem>>, %arg6: memref<1x128xf32, #tpu.memory_space<vmem>>, %arg7: memref<1x128xf32, #tpu.memory_space<vmem>>) attributes {dimension_semantics = [#tpu.dimension_semantics<arbitrary>], iteration_bounds = array<i64: 3>, scalar_prefetch = 0 : i64, scratch_operands = 3 : i64, tpu.core_type = #tpu.core_type<tc>, window_params = [{transform_indices = @transform_0, window_bounds = array<i64: 2, 128>}, {transform_indices = @transform_1, window_bounds = array<i64: 4, 128>}, {transform_indices = @transform_2, window_bounds = array<i64: 1, 128>}, {pipeline_mode = #tpu.pipeline_mode<synchronous>, transform_indices = @transform_3, window_bounds = array<i64: 8, 128>}]} {
    %c0_i32 = arith.constant 0 : i32
    %0 = arith.cmpi eq, %arg0, %c0_i32 : i32
    %1 = arith.extui %0 : i1 to i32
    %c0_i32_0 = arith.constant 0 : i32
    %2 = arith.cmpi ne, %1, %c0_i32_0 : i32
    scf.if %2 {
      %cst = arith.constant 0.000000e+00 : f32
      %21 = vector.broadcast %cst : f32 to vector<1x128xf32>
      %c0 = arith.constant 0 : index
      %c0_9 = arith.constant 0 : index
      %22 = vector.load %arg5[%c0, %c0_9] : memref<1x128xf32, #tpu.memory_space<vmem>>, vector<1x128xf32>
      tpu.vector_store %arg5[%c0, %c0_9], %21 {strides = array<i32>} : memref<1x128xf32, #tpu.memory_space<vmem>>, vector<1x128xf32>,
      %cst_10 = arith.constant 0.000000e+00 : f32
      %23 = vector.broadcast %cst_10 : f32 to vector<1x128xf32>
      %c0_11 = arith.constant 0 : index
      %c0_12 = arith.constant 0 : index
      %24 = vector.load %arg6[%c0_11, %c0_12] : memref<1x128xf32, #tpu.memory_space<vmem>>, vector<1x128xf32>
      tpu.vector_store %arg6[%c0_11, %c0_12], %23 {strides = array<i32>} : memref<1x128xf32, #tpu.memory_space<vmem>>, vector<1x128xf32>,
      %cst_13 = arith.constant 0.000000e+00 : f32
      %25 = vector.broadcast %cst_13 : f32 to vector<1x128xf32>
      %c0_14 = arith.constant 0 : index
      %c0_15 = arith.constant 0 : index
      %26 = vector.load %arg7[%c0_14, %c0_15] : memref<1x128xf32, #tpu.memory_space<vmem>>, vector<1x128xf32>
      tpu.vector_store %arg7[%c0_14, %c0_15], %25 {strides = array<i32>} : memref<1x128xf32, #tpu.memory_space<vmem>>, vector<1x128xf32>,
    } else {
    }
    %c0_i32_1 = arith.constant 0 : i32
    %3 = arith.cmpi sge, %arg0, %c0_i32_1 : i32
    %c1_i32 = arith.constant 1 : i32
    %4 = arith.cmpi slt, %arg0, %c1_i32 : i32
    %5 = arith.andi %3, %4 : i1
    %6 = arith.extui %5 : i1 to i32
    %c0_i32_2 = arith.constant 0 : i32
    %7 = arith.cmpi ne, %6, %c0_i32_2 : i32
    scf.if %7 {
      %c0 = arith.constant 0 : index
      %c0_9 = arith.constant 0 : index
      %21 = vector.load %arg1[%c0, %c0_9] : memref<2x128xf32, #tpu.memory_space<vmem>>, vector<2x128xf32>
      %c0_10 = arith.constant 0 : index
      %c0_11 = arith.constant 0 : index
      %22 = vector.load %arg5[%c0_10, %c0_11] : memref<1x128xf32, #tpu.memory_space<vmem>>, vector<1x128xf32>
      %23 = arith.mulf %21, %21 : vector<2x128xf32>
      %cst = arith.constant dense<0.000000e+00> : vector<128xf32>
      %24 = vector.multi_reduction <add>, %23, %cst [0] : vector<2x128xf32> to vector<128xf32>
      %25 = vector.shape_cast %24 : vector<128xf32> to vector<1x128xf32>
      %26 = arith.addf %22, %25 : vector<1x128xf32>
      %c0_12 = arith.constant 0 : index
      %c0_13 = arith.constant 0 : index
      %27 = vector.load %arg5[%c0_12, %c0_13] : memref<1x128xf32, #tpu.memory_space<vmem>>, vector<1x128xf32>
      tpu.vector_store %arg5[%c0_12, %c0_13], %26 {strides = array<i32>} : memref<1x128xf32, #tpu.memory_space<vmem>>, vector<1x128xf32>,
    } else {
    }
    %c1_i32_3 = arith.constant 1 : i32
    %8 = arith.cmpi sge, %arg0, %c1_i32_3 : i32
    %c2_i32 = arith.constant 2 : i32
    %9 = arith.cmpi slt, %arg0, %c2_i32 : i32
    %10 = arith.andi %8, %9 : i1
    %11 = arith.extui %10 : i1 to i32
    %c0_i32_4 = arith.constant 0 : i32
    %12 = arith.cmpi ne, %11, %c0_i32_4 : i32
    scf.if %12 {
      %c0 = arith.constant 0 : index
      %c0_9 = arith.constant 0 : index
      %21 = vector.load %arg2[%c0, %c0_9] : memref<4x128xf32, #tpu.memory_space<vmem>>, vector<4x128xf32>
      %c0_10 = arith.constant 0 : index
      %c0_11 = arith.constant 0 : index
      %22 = vector.load %arg6[%c0_10, %c0_11] : memref<1x128xf32, #tpu.memory_space<vmem>>, vector<1x128xf32>
      %23 = arith.mulf %21, %21 : vector<4x128xf32>
      %cst = arith.constant dense<0.000000e+00> : vector<128xf32>
      %24 = vector.multi_reduction <add>, %23, %cst [0] : vector<4x128xf32> to vector<128xf32>
      %25 = vector.shape_cast %24 : vector<128xf32> to vector<1x128xf32>
      %26 = arith.addf %22, %25 : vector<1x128xf32>
      %c0_12 = arith.constant 0 : index
      %c0_13 = arith.constant 0 : index
      %27 = vector.load %arg6[%c0_12, %c0_13] : memref<1x128xf32, #tpu.memory_space<vmem>>, vector<1x128xf32>
      tpu.vector_store %arg6[%c0_12, %c0_13], %26 {strides = array<i32>} : memref<1x128xf32, #tpu.memory_space<vmem>>, vector<1x128xf32>,
    } else {
    }
    %c2_i32_5 = arith.constant 2 : i32
    %13 = arith.cmpi sge, %arg0, %c2_i32_5 : i32
    %c3_i32 = arith.constant 3 : i32
    %14 = arith.cmpi slt, %arg0, %c3_i32 : i32
    %15 = arith.andi %13, %14 : i1
    %16 = arith.extui %15 : i1 to i32
    %c0_i32_6 = arith.constant 0 : i32
    %17 = arith.cmpi ne, %16, %c0_i32_6 : i32
    scf.if %17 {
      %c0 = arith.constant 0 : index
      %c0_9 = arith.constant 0 : index
      %21 = vector.load %arg3[%c0, %c0_9] : memref<1x128xbf16, #tpu.memory_space<vmem>>, vector<1x128xbf16>
      %22 = arith.extf %21 : vector<1x128xbf16> to vector<1x128xf32>
      %c0_10 = arith.constant 0 : index
      %c0_11 = arith.constant 0 : index
      %23 = vector.load %arg7[%c0_10, %c0_11] : memref<1x128xf32, #tpu.memory_space<vmem>>, vector<1x128xf32>
      %24 = arith.mulf %22, %22 : vector<1x128xf32>
      %cst = arith.constant dense<0.000000e+00> : vector<128xf32>
      %25 = vector.multi_reduction <add>, %24, %cst [0] : vector<1x128xf32> to vector<128xf32>
      %26 = vector.shape_cast %25 : vector<128xf32> to vector<1x128xf32>
      %27 = arith.addf %23, %26 : vector<1x128xf32>
      %c0_12 = arith.constant 0 : index
      %c0_13 = arith.constant 0 : index
      %28 = vector.load %arg7[%c0_12, %c0_13] : memref<1x128xf32, #tpu.memory_space<vmem>>, vector<1x128xf32>
      tpu.vector_store %arg7[%c0_12, %c0_13], %27 {strides = array<i32>} : memref<1x128xf32, #tpu.memory_space<vmem>>, vector<1x128xf32>,
    } else {
    }
    %c2_i32_7 = arith.constant 2 : i32
    %18 = arith.cmpi eq, %arg0, %c2_i32_7 : i32
    %19 = arith.extui %18 : i1 to i32
    %c0_i32_8 = arith.constant 0 : i32
    %20 = arith.cmpi ne, %19, %c0_i32_8 : i32
    scf.if %20 {
      %c0 = arith.constant 0 : index
      %c0_9 = arith.constant 0 : index
      %21 = vector.load %arg5[%c0, %c0_9] : memref<1x128xf32, #tpu.memory_space<vmem>>, vector<1x128xf32>
      %22 = vector.shape_cast %21 : vector<1x128xf32> to vector<1x1x128xf32>
      %cst = arith.constant dense<0.000000e+00> : vector<1xf32>
      %23 = vector.multi_reduction <add>, %22, %cst [1, 2] : vector<1x1x128xf32> to vector<1xf32>
      %24 = vector.shape_cast %23 : vector<1xf32> to vector<1x1x1xf32>
      %25 = vector.extract %24[0, 0, 0] : f32 from vector<1x1x1xf32>
      %26 = math.sqrt %25 : f32
      %cst_10 = arith.constant 0.000000e+00 : f32
      %27 = arith.addf %cst_10, %26 : f32
      %c0_11 = arith.constant 0 : index
      %c0_12 = arith.constant 0 : index
      %28 = vector.load %arg6[%c0_11, %c0_12] : memref<1x128xf32, #tpu.memory_space<vmem>>, vector<1x128xf32>
      %29 = vector.shape_cast %28 : vector<1x128xf32> to vector<1x1x128xf32>
      %cst_13 = arith.constant dense<0.000000e+00> : vector<1xf32>
      %30 = vector.multi_reduction <add>, %29, %cst_13 [1, 2] : vector<1x1x128xf32> to vector<1xf32>
      %31 = vector.shape_cast %30 : vector<1xf32> to vector<1x1x1xf32>
      %32 = vector.extract %31[0, 0, 0] : f32 from vector<1x1x1xf32>
      %33 = math.sqrt %32 : f32
      %34 = arith.addf %27, %33 : f32
      %c0_14 = arith.constant 0 : index
      %c0_15 = arith.constant 0 : index
      %35 = vector.load %arg7[%c0_14, %c0_15] : memref<1x128xf32, #tpu.memory_space<vmem>>, vector<1x128xf32>
      %36 = vector.shape_cast %35 : vector<1x128xf32> to vector<1x1x128xf32>
      %cst_16 = arith.constant dense<0.000000e+00> : vector<1xf32>
      %37 = vector.multi_reduction <add>, %36, %cst_16 [1, 2] : vector<1x1x128xf32> to vector<1xf32>
      %38 = vector.shape_cast %37 : vector<1xf32> to vector<1x1x1xf32>
      %39 = vector.extract %38[0, 0, 0] : f32 from vector<1x1x1xf32>
      %40 = math.sqrt %39 : f32
      %41 = arith.addf %34, %40 : f32
      %cst_17 = arith.constant 2.500000e-01 : f32
      %42 = arith.mulf %41, %cst_17 : f32
      %43 = vector.broadcast %42 : f32 to vector<8x128xf32>
      %c0_18 = arith.constant 0 : index
      %c0_19 = arith.constant 0 : index
      %44 = vector.load %arg4[%c0_18, %c0_19] : memref<8x128xf32, #tpu.memory_space<vmem>>, vector<8x128xf32>
      tpu.vector_store %arg4[%c0_18, %c0_19], %43 {strides = array<i32>} : memref<8x128xf32, #tpu.memory_space<vmem>>, vector<8x128xf32>,
    } else {
    }
    return
  }
  func.func @transform_0(%arg0: i32) -> (i32, i32) {
    %c0_i32 = arith.constant 0 : i32
    %0 = arith.subi %arg0, %c0_i32 : i32
    %c0_i32_0 = arith.constant 0 : i32
    %c0_i32_1 = arith.constant 0 : i32
    %1 = arith.maxsi %c0_i32_0, %0 : i32
    %2 = arith.minsi %c0_i32_1, %1 : i32
    %c0_i32_2 = arith.constant 0 : i32
    %c0_i32_3 = arith.constant 0 : i32
    return %2, %c0_i32_2 : i32, i32
  }
  func.func @transform_1(%arg0: i32) -> (i32, i32) {
    %c1_i32 = arith.constant 1 : i32
    %0 = arith.subi %arg0, %c1_i32 : i32
    %c0_i32 = arith.constant 0 : i32
    %c0_i32_0 = arith.constant 0 : i32
    %1 = arith.maxsi %c0_i32, %0 : i32
    %2 = arith.minsi %c0_i32_0, %1 : i32
    %c0_i32_1 = arith.constant 0 : i32
    %c0_i32_2 = arith.constant 0 : i32
    return %2, %c0_i32_1 : i32, i32
  }
  func.func @transform_2(%arg0: i32) -> (i32, i32) {
    %c2_i32 = arith.constant 2 : i32
    %0 = arith.subi %arg0, %c2_i32 : i32
    %c0_i32 = arith.constant 0 : i32
    %c0_i32_0 = arith.constant 0 : i32
    %1 = arith.maxsi %c0_i32, %0 : i32
    %2 = arith.minsi %c0_i32_0, %1 : i32
    %c0_i32_1 = arith.constant 0 : i32
    %c0_i32_2 = arith.constant 0 : i32
    return %2, %c0_i32_1 : i32, i32
  }
  func.func @transform_3(%arg0: i32) -> (i32, i32) {
    %c0_i32 = arith.constant 0 : i32
    %c0_i32_0 = arith.constant 0 : i32
    %c0_i32_1 = arith.constant 0 : i32
    return %c0_i32, %c0_i32_0 : i32, i32
  }
}

</mosaic_0001>

<bundles_post_ra>
// kernel: tpu_custom_call.1
= control target key start
LH: loop header
LB: loop body
LE: loop exit
PB: predicated region body
PF: predicated region fallthrough
CT: control target
= control target key end

     0   :  { %8 = vsyncpa [#allocation6], 0  ;;  %s830_s0 = inlined_call_operand.hbm [shape: f32[2,128], index: 0, kind: input, shape index: {}]   ;;  %s831_s1 = inlined_call_operand.hbm [shape: f32[4,128], index: 1, kind: input, shape index: {}]   ;;  %s832_s2 = inlined_call_operand.vmem [shape: bf16[1,128], index: 2, kind: input, shape index: {}]   ;;  %s833_s3 = inlined_call_operand.hbm [shape: f32[8,128], index: 3, kind: output, shape index: {}]  }
   0x1   :  { %10 = vsyncpa [#allocation6 + $0x1], 0 }
   0x2   :  { %11 = vsyncpa [#allocation9], 0 }
   0x3   :  { %13 = vsyncpa [#allocation9 + $0x1], 0 }
   0x4   :  { %14 = vsyncpa [#allocation7], 0  ;;  %s782_s12 = smov 0  }
   0x5 LB: > { %s179_s15 = sshll.u32 %s830_s0, 4  ;;  %s791_s16 = sadd.s32 4294967295, %s756_s12   ;;  %s756_s12 = sphi %s782_s12, %s20_s12   ;;  %s180_s15 = int_to_ptr.hbm [resolvable:$true] %s179_s15 }
   0x6   : > { %p43_p0 = scmp.eq.s32.totalorder %s756_s12, 0  ;;  %p49_p1 = scmp.eq.s32.totalorder %s791_s16, 0 }
   0x7   : > { %p629_p2 = scmp.lt.s32.totalorder %s756_s12, 3  ;;  %s758_s17 = smov [#allocation5]  }
   0x8   : > { %s181_s18 = sshll.u32 %s758_s17, 4  ;;  %p587_p3 = scmp.ge.s32.totalorder %s756_s12, 1  ;;  %s182_s18 = int_to_ptr.vmem [resolvable:$true] %s181_s18 }
   0x9   : > { %p623_p4 = pnand %p629_p2, %p43_p0  ;;  %p226_p5 = scmp.lt.s32.totalorder %s756_s12, 4 }
   0xa   : > { %s203_s21 = sshll.u32 %s831_s1, 4  ;;  %s759_s22 = smov [#allocation8]   ;;  %s204_s21 = int_to_ptr.hbm [resolvable:$true] %s203_s21 }
   0xb   : > { %625 = dma.hbm_to_vmem [thread:$0]  (!%p623_p4), %s180_s15, 32, %s182_s18, [#allocation6]  }
   0xc   : > { %p227_p6 = pnand %p587_p3, %p226_p5  ;;  %s205_s23 = sshll.u32 %s759_s22, 4  ;;  %s206_s23 = int_to_ptr.vmem [resolvable:$true] %s205_s23 }
   0xd   : > { %628 = dma.hbm_to_vmem [thread:$0]  (!%p623_p4), %s204_s21, 64, %s206_s23, [#allocation9]  }
   0xe   : > { %230 = sbr.rel (%p227_p6) target bundleno = 522 (0x20a), region = 32 }
  0x13   : > { %743 = dma.done.wait (%p49_p1), [#allocation6], 32  }
  0x14   : > { %745 = vsyncadd (%p49_p1), [#allocation6], 4294967264 }
  0x15   : > { %747 = dma.done.wait (%p49_p1), [#allocation9], 64  }
  0x16   : > { %749 = vsyncadd (%p49_p1), [#allocation9], 4294967232  ;;  %p596_p7 = scmp.ne.s32.totalorder %s791_s16, 0 }
  0x18   : > { %303 = sbr.rel (%p596_p7) target bundleno = 33 (0x21), region = 44 }
  0x1d   : > { %v760_v0 = vmov 0.0  }
  0x1e   : > { %304 = vst [vmem:[#allocation2] sm:$0x1] %v760_v0 }
  0x1f   : > { %305 = vst [vmem:[#allocation3] sm:$0x1] %v760_v0 }
  0x20   : > { %306 = vst [vmem:[#allocation4] sm:$0x1] %v760_v0 }
  0x21 PF: > { %p307_p8 = scmp.ge.s32.totalorder %s791_s16, 0  ;;  %p308_p9 = scmp.lt.s32.totalorder %s791_s16, 1 }
  0x23   : > { %p309_p10 = pnand %p308_p9, %p307_p8 }
  0x25   : > { %312 = sbr.rel (%p309_p10) target bundleno = 61 (0x3d), region = 48 }
  0x2a   : > { %v313_v1 = vld [vmem:[#allocation5] sm:$0x3]  ;;  %vm316_vm0 = vcmask 1041408   ;;  %v314_v9 = vld [vmem:[#allocation2] sm:$0x1] }
  0x2b   : > { %v315_v2 = vmul.f32 %v313_v1, %v313_v1 }
  0x2d   : > { %v317_v3 = vsel %vm316_vm0, %v315_v2, 0.0 }
  0x2e   : > { %v318_v4 = vrot.slane %v317_v3, 4 }
  0x30   : > { %v319_v5 = vadd.f32 %v318_v4, %v317_v3 }
  0x32   : > { %v320_v6 = vrot.slane %v319_v5, 2 }
  0x34   : > { %v321_v7 = vadd.f32 %v320_v6, %v319_v5 }
  0x36   : > { %v322_v8 = vrot.slane %v321_v7, 1 }
  0x38   : > { %v323_v10 = vadd.f32 %v322_v8, %v321_v7 }
  0x3a   : > { %v324_v11 = vadd.f32 %v323_v10, %v314_v9 }
  0x3c   : > { %325 = vst [vmem:[#allocation2] sm:$0x1] %v324_v11 }
  0x3d PF: > { %p326_p11 = scmp.ge.s32.totalorder %s791_s16, 1  ;;  %p327_p12 = scmp.lt.s32.totalorder %s791_s16, 2 }
  0x3f   : > { %p328_p13 = pnand %p327_p12, %p326_p11 }
  0x41   : > { %331 = sbr.rel (%p328_p13) target bundleno = 89 (0x59), region = 52 }
  0x46   : > { %v332_v12 = vld [vmem:[#allocation8] sm:$0xf]  ;;  %vm335_vm1 = vcmask 1043456   ;;  %v333_v20 = vld [vmem:[#allocation3] sm:$0x1] }
  0x47   : > { %v334_v13 = vmul.f32 %v332_v12, %v332_v12 }
  0x49   : > { %v336_v14 = vsel %vm335_vm1, %v334_v13, 0.0 }
  0x4a   : > { %v337_v15 = vrot.slane %v336_v14, 4 }
  0x4c   : > { %v338_v16 = vadd.f32 %v337_v15, %v336_v14 }
  0x4e   : > { %v339_v17 = vrot.slane %v338_v16, 2 }
  0x50   : > { %v340_v18 = vadd.f32 %v339_v17, %v338_v16 }
  0x52   : > { %v341_v19 = vrot.slane %v340_v18, 1 }
  0x54   : > { %v342_v21 = vadd.f32 %v341_v19, %v340_v18 }
  0x56   : > { %v343_v22 = vadd.f32 %v342_v21, %v333_v20 }
  0x58   : > { %344 = vst [vmem:[#allocation3] sm:$0x1] %v343_v22 }
  0x59 PF: > { %p345_p0 = scmp.ge.s32.totalorder %s791_s16, 2  ;;  %p346_p1 = scmp.lt.s32.totalorder %s791_s16, 3 }
  0x5b   : > { %p347_p2 = pnand %p346_p1, %p345_p0 }
  0x5d   : > { %350 = sbr.rel (%p347_p2) target bundleno = 106 (0x6a), region = 56 }
  0x62   : > { %v351_v23 = vld [vmem:[%s832_s2] sm:$0x1]  ;;  %v353_v25 = vld [vmem:[#allocation4] sm:$0x1] }
  0x63   : > { %v352_v24 = vunpack.c.l.bf16 %v351_v23 }
  0x65   : > { %v354_v26 = vmul.f32 %v352_v24, %v352_v24 }
  0x67   : > { %v356_v27 = vadd.f32 %v354_v26, %v353_v25 }
  0x69   : > { %357 = vst [vmem:[#allocation4] sm:$0x1] %v356_v27 }
  0x6a PF: > { %p597_p3 = scmp.ne.s32.totalorder %s791_s16, 2 }
  0x6c   : > { %361 = sbr.rel (%p597_p3) target bundleno = 517 (0x205), region = 60 }
  0x71   : > { %v362_v28 = vld [vmem:[#allocation2] sm:$0x1]  ;;  %vm363_vm2 = vcmask 1040384   ;;  %v389_v30 = vld [vmem:[#allocation3] sm:$0x1] }
  0x72   : > { %v364_v29 = vsel %vm363_vm2, %v362_v28, 0.0  ;;  %v390_v31 = vsel %vm363_vm2, %v389_v30, 0.0  ;;  %v415_v32 = vld [vmem:[#allocation4] sm:$0x1] }
  0x73   : > { %365 = vadd.xlane.f32.xlu0 %v364_v29  ;;  %v416_v33 = vsel %vm363_vm2, %v415_v32, 0.0 }
  0x74   : > { %417 = vadd.xlane.f32.xlu1 %v416_v33 }
  0x7b   : > { %391 = vadd.xlane.f32.xlu0 %v390_v31 }
  0xe6   : > { %v366_v34 = vpop.xlane.xlu0 %365 }
  0xe7   : > { %v367_v35 = vrot.slane %v366_v34, 4  ;;  %v418_v59 = vpop.xlane.xlu1 %417 }
  0xe8   : > { %v419_v61 = vrot.slane %v418_v59, 4 }
  0xe9   : > { %v368_v36 = vadd.f32 %v367_v35, %v366_v34 }
  0xea   : > { %v420_v62 = vadd.f32 %v419_v61, %v418_v59 }
  0xeb   : > { %v369_v37 = vrot.slane %v368_v36, 2 }
  0xec   : > { %v421_v1 = vrot.slane %v420_v62, 2 }
  0xed   : > { %v370_v38 = vadd.f32 %v369_v37, %v368_v36 }
  0xee   : > { %v392_v41 = vpop.xlane.xlu0 %391  ;;  %v422_v4 = vadd.f32 %v421_v1, %v420_v62 }
  0xef   : > { %v371_v39 = vrot.slane %v370_v38, 1  ;;  %v393_v43 = vrot.slane %v392_v41, 4 }
  0xf0   : > { %v423_v7 = vrot.slane %v422_v4, 1 }
  0xf1   : > { %v372_v40 = vadd.f32 %v371_v39, %v370_v38  ;;  %v394_v44 = vadd.f32 %v393_v43, %v392_v41 }
  0xf2   : > { %v424_v12 = vadd.f32 %v423_v7, %v422_v4 }
  0xf3   : > { %602 = vpush %v372_v40  ;;  %v395_v47 = vrot.slane %v394_v44, 2 }
  0xf5   : > { %v396_v50 = vadd.f32 %v395_v47, %v394_v44 }
  0xf7   : > { %v397_v53 = vrot.slane %v396_v50, 1 }
  0xf9   : > { %v398_v58 = vadd.f32 %v397_v53, %v396_v50 }
 0x124   : > { %s603_s26 = spop %602 }
 0x125   : > { %v374_v42 = vstv %s603_s26 }
 0x126   : > { %644 = vrsqrt.f32 %v374_v42  ;;  %vm382_vm3 = vcmp.eq.f32.partialorder %v374_v42, inf  ;;  %v385_v55 = vand.u32 2147483648, %v374_v42  ;;  %vm384_vm4 = vcmp.eq.f32.partialorder %v374_v42, 0.0 }
 0x12c   : > { %v645_v45 = vpop.eup %644 }
 0x12d   : > { %v376_v46 = vmul.f32 %v645_v45, %v374_v42 }
 0x12f   : > { %v377_v48 = vmul.f32 %v645_v45, %v376_v46 }
 0x131   : > { %v378_v49 = vmul.f32 0.5, %v377_v48 }
 0x133   : > { %v379_v51 = vsub.f32 1.5, %v378_v49 }
 0x135   : > { %v380_v52 = vmul.f32 %v645_v45, %v379_v51 }
 0x137   : > { %v381_v54 = vmul.f32 %v380_v52, %v374_v42 }
 0x139   : > { %v383_v56 = vsel %vm382_vm3, %v374_v42, %v381_v54 }
 0x13a   : > { %v386_v57 = vsel %vm384_vm4, %v385_v55, %v383_v56 }
 0x13b   : > { %604 = vpush %v386_v57 }
 0x13c   : > { %606 = vpush %v398_v58 }
 0x16c   : > { %s820_s27 = spop %604 }
 0x16d   : > { %s607_s28 = spop %606 }
 0x16e   : > { %v400_v60 = vstv %s607_s28 }
 0x16f   : > { %646 = vrsqrt.f32 %v400_v60  ;;  %vm408_vm5 = vcmp.eq.f32.partialorder %v400_v60, inf  ;;  %v411_v9 = vand.u32 2147483648, %v400_v60  ;;  %vm410_vm6 = vcmp.eq.f32.partialorder %v400_v60, 0.0 }
 0x175   : > { %v647_v63 = vpop.eup %646 }
 0x176   : > { %v402_v0 = vmul.f32 %v647_v63, %v400_v60 }
 0x178   : > { %v403_v2 = vmul.f32 %v647_v63, %v402_v0 }
 0x17a   : > { %v404_v3 = vmul.f32 0.5, %v403_v2 }
 0x17c   : > { %v405_v5 = vsub.f32 1.5, %v404_v3 }
 0x17e   : > { %v406_v6 = vmul.f32 %v647_v63, %v405_v5 }
 0x180   : > { %v407_v8 = vmul.f32 %v406_v6, %v400_v60 }
 0x182   : > { %v409_v10 = vsel %vm408_vm5, %v400_v60, %v407_v8 }
 0x183   : > { %v412_v11 = vsel %vm410_vm6, %v411_v9, %v409_v10 }
 0x184   : > { %608 = vpush %v412_v11 }
 0x185   : > { %610 = vpush %v424_v12 }
 0x1b5   : > { %s609_s29 = spop %608 }
 0x1b6   : > { %s611_s30 = spop %610  ;;  %s414_s4 = sadd.f32 %s609_s29, %s820_s27 }
 0x1b7   : > { %v426_v13 = vstv %s611_s30 }
 0x1b8   : > { %648 = vrsqrt.f32 %v426_v13  ;;  %vm434_vm7 = vcmp.eq.f32.partialorder %v426_v13, inf  ;;  %v437_v21 = vand.u32 2147483648, %v426_v13  ;;  %vm436_vm8 = vcmp.eq.f32.partialorder %v426_v13, 0.0 }
 0x1be   : > { %v649_v14 = vpop.eup %648 }
 0x1bf   : > { %v428_v15 = vmul.f32 %v649_v14, %v426_v13 }
 0x1c1   : > { %v429_v16 = vmul.f32 %v649_v14, %v428_v15 }
 0x1c3   : > { %v430_v17 = vmul.f32 0.5, %v429_v16 }
 0x1c5   : > { %v431_v18 = vsub.f32 1.5, %v430_v17 }
 0x1c7   : > { %v432_v19 = vmul.f32 %v649_v14, %v431_v18 }
 0x1c9   : > { %v433_v20 = vmul.f32 %v432_v19, %v426_v13 }
 0x1cb   : > { %v435_v22 = vsel %vm434_vm7, %v426_v13, %v433_v20 }
 0x1cc   : > { %v438_v23 = vsel %vm436_vm8, %v437_v21, %v435_v22 }
 0x1cd   : > { %612 = vpush %v438_v23 }
 0x1fe   : > { %s613_s5 = spop %612 }
 0x1ff   : > { %s440_s6 = sadd.f32 %s613_s5, %s414_s4 }
 0x201   : > { %s441_s7 = smul.f32 0.25, %s440_s6 }
 0x203   : > { %v442_v24 = vstv %s441_s7 }
 0x204   : > { %443 = vst [vmem:[#allocation10] sm:$0xff] %v442_v24 }
 0x205 PF: > { %p630_p4 = scmp.eq.s32.totalorder %s791_s16, 2  ;;  %s761_s8 = smov [#allocation10]  }
 0x206   : > { %s450_s9 = sshll.u32 %s761_s8, 4  ;;  %s452_s13 = sshll.u32 %s833_s3, 4  ;;  %s451_s9 = int_to_ptr.vmem [resolvable:$true] %s450_s9  ;;  %s453_s13 = int_to_ptr.hbm [resolvable:$true] %s452_s13 }
 0x207   : > { %619 = dma.vmem_to_hbm [thread:$0]  (%p630_p4), %s451_s9, 128, %s453_s13, [#allocation7]  }
 0x208   : > { %751 = dma.done.wait (%p630_p4), [#allocation7], 128  }
 0x209   : > { %753 = vsyncadd (%p630_p4), [#allocation7], 4294967168 }
 0x20a PF: > { %s20_s12 = sadd.s32 1, %s756_s12  }
 0x20b   : > { %p17_p5 = scmp.ge.s32.totalorder %s20_s12, 5  }
 0x20d   :  { %19 = sbr.rel (!%p17_p5) target bundleno = 5 (0x5), region = 105 }
 0x212   :  { %466 = vsyncpa [#allocation6], 1 }
 0x213   :  { %468 = vsyncpa [#allocation6 + $0x1], 1 }
 0x214   :  { %469 = vsyncpa [#allocation9], 1 }
 0x215   :  { %471 = vsyncpa [#allocation9 + $0x1], 1 }
 0x216   :  { %472 = vsyncpa [#allocation7], 1 }
 0x217   :  { %474 = vsyncpa [#allocation7 + $0x1], 1 }

</bundles_post_ra>
